<compile_context>
chip_gen: v7x
topology: tpu7x:2x2x1
jax: 0.10.0
libtpu: 0.0.40
codegen_flags: <defaults>
</compile_context>

<pallas_src>
import math

import jax
import jax.numpy as jnp
from jax.experimental import pallas as pl
from jax.experimental.pallas import tpu as pltpu


def _dma_copy_kernel(x_hbm_ref, o_hbm_ref, sem):
    # Both refs live in HBM (memory_space=pl.ANY): issue one whole-buffer
    # HBM->HBM DMA.  The DMA engine streams at HBM bandwidth with no
    # per-grid-step overhead and no VMEM staging.
    cp = pltpu.make_async_copy(x_hbm_ref, o_hbm_ref, sem)
    cp.start()
    cp.wait()


def _materialized_copy_2d(x2d: jax.Array) -> jax.Array:
    """Physical copy of x2d (B, F) into a fresh buffer via a single HBM DMA."""
    B, F = x2d.shape
    nbytes = B * F * jnp.dtype(x2d.dtype).itemsize
    return pl.pallas_call(
        _dma_copy_kernel,
        out_shape=jax.ShapeDtypeStruct((B, F), x2d.dtype),
        in_specs=[pl.BlockSpec(memory_space=pl.ANY)],
        out_specs=pl.BlockSpec(memory_space=pl.ANY),
        scratch_shapes=[pltpu.SemaphoreType.DMA],
        cost_estimate=pl.CostEstimate(
            flops=0, transcendentals=0, bytes_accessed=2 * nbytes
        ),
    )(x2d)


def flatten_pallas(x: jax.Array, *, materialize: bool = False) -> jax.Array:
    """Equivalent of torch.flatten(x, 1).

    Default (materialize=False): zero-cost row-major reshape — the optimal
    implementation, no HBM traffic.

    materialize=True: additionally routes the bytes through a single
    HBM->HBM DMA Pallas kernel, producing an independent output buffer.
    Works for any shape/dtype (no 128-multiple restriction).
    """
    B = x.shape[0]
    F = math.prod(x.shape[1:]) if x.ndim > 1 else 1
    x2d = jnp.reshape(x, (B, F))  # row-major reshape == torch.flatten(x, 1)
    if not materialize:
        return x2d
    return _materialized_copy_2d(x2d)


if __name__ == "__main__":
    key = jax.random.PRNGKey(0)
    # Small NCHW input consistent with a conv-net feature map: (B, C, H, W).
    x = jax.random.normal(key, (2, 4, 16, 16), dtype=jnp.float32)

    # Default (production) path: free reshape.
    out_free = flatten_pallas(x)
    # Pallas DMA-copy path, exercised explicitly for validation.
    out_copy = jax.block_until_ready(flatten_pallas(x, materialize=True))

    ref = jnp.reshape(x, (x.shape[0], -1))
    assert out_copy.shape == (2, 4 * 16 * 16), out_copy.shape
    assert out_copy.dtype == x.dtype
    assert bool(jnp.all(out_copy == ref))
    assert bool(jnp.all(out_free == ref))

    # The DMA path has no lane/size restrictions — check an "awkward" shape too.
    x_odd = jax.random.normal(jax.random.PRNGKey(1), (2, 3, 5, 7), jnp.float32)
    out_odd = jax.block_until_ready(flatten_pallas(x_odd, materialize=True))
    assert bool(jnp.all(out_odd == jnp.reshape(x_odd, (2, -1))))

    print("KERNEL_OK")
</pallas_src>

<mosaic_0001>
module attributes {stable_mosaic.version = 11 : i64} {
  func.func @_dma_copy_kernel(%arg0: memref<2x1024xf32, #tpu.memory_space<any>>, %arg1: memref<2x1024xf32, #tpu.memory_space<any>>, %arg2: memref<!tpu.dma_semaphore, #tpu.memory_space<semaphore_mem>>) attributes {dimension_semantics = [], scalar_prefetch = 0 : i64, scratch_operands = 1 : i64, tpu.core_type = #tpu.core_type<tc>} {
    tpu.enqueue_dma source(%arg0 : memref<2x1024xf32, #tpu.memory_space<any>>) target(%arg1 : memref<2x1024xf32, #tpu.memory_space<any>>) target_semaphore(%arg2 : memref<!tpu.dma_semaphore, #tpu.memory_space<semaphore_mem>>)
    tpu.wait_dma2 semaphore(%arg2 : memref<!tpu.dma_semaphore, #tpu.memory_space<semaphore_mem>>) src(%arg0 : memref<2x1024xf32, #tpu.memory_space<any>>) dst(%arg1 : memref<2x1024xf32, #tpu.memory_space<any>>)
    return
  }
}

</mosaic_0001>

<bundles_post_ra>
// kernel: tpu_custom_call.1
= control target key start
LH: loop header
LB: loop body
LE: loop exit
PB: predicated region body
PF: predicated region fallthrough
CT: control target
= control target key end

     0   :  { %s35_s6 = smov [#allocation2]   ;;  %s36_s7 = smov [#allocation3]   ;;  %s54_s0 = inlined_call_operand.hbm [shape: f32[2,1024], index: 0, kind: input, shape index: {}]   ;;  %s55_s1 = inlined_call_operand.hbm [shape: f32[2,1024], index: 1, kind: output, shape index: {}]  }
   0x1   :  { %s37_s8 = smov 0  }
   0x2   :  { %18 = dma.general %s54_s0, 256, %s55_s1, %s35_s6, %s36_s7, [#allocation4], %s37_s8, 0  }
   0x3   :  { %33 = dma.done.wait [#allocation2], 256 }
   0x4   :  { %34 = vsyncadd [#allocation2], 4294967040 }
   0x5   :  { %23 = vsyncmov [#allocation2] }
   0x8   :  { %s24_s13 = vpop.sfrf %23 }
   0x9   :  { %p29_p0 = scmp.ne.s32.totalorder %s24_s13, 0 }
   0xb   :  { %28 = shalt.err (%p29_p0)  }

</bundles_post_ra>
